<compile_context>
chip_gen: v5e
topology: v5e:2x2
jax: 0.10.0
libtpu: 0.0.40
codegen_flags: <defaults>
</compile_context>

<pallas_src>
import functools

import jax
import jax.numpy as jnp
from jax.experimental import pallas as pl
from jax.experimental.pallas import tpu as pltpu


def _round_up(n, m):
    return ((n + m - 1) // m) * m


# ----------------------------------------------------------------------------
# Parameter packing (host side): pad channels to 128 lanes, keep per-tap weight
# matrices (k, Cin_p, Cout_p), fuse the 1x1 downsample as extra output columns
# of the un-shifted tap (k-1).
# NOTE: expects weights as (k, Cin, Cout); PyTorch Conv1d stores (Cout, Cin, k)
# so callers must transpose (2, 1, 0) first.
# ----------------------------------------------------------------------------
def pack_temporal_block_params(w1, b1, w2, b2, wd=None, bd=None):
    k, cin, cout = w1.shape
    cin_p = _round_up(cin, 128)
    cout_p = _round_up(cout, 128)
    has_down = wd is not None
    if not has_down:
        assert cin == cout, "identity residual requires n_inputs == n_outputs"
    n1 = 2 * cout_p if has_down else cout_p

    w1p = jnp.zeros((k, cin_p, n1), jnp.float32)
    w1p = w1p.at[:, :cin, :cout].set(w1.astype(jnp.float32))
    b1p = jnp.zeros((1, n1), jnp.float32).at[0, :cout].set(b1.astype(jnp.float32))
    if has_down:
        w1p = w1p.at[k - 1, :cin, cout_p:cout_p + cout].set(wd.astype(jnp.float32))
        b1p = b1p.at[0, cout_p:cout_p + cout].set(bd.astype(jnp.float32))

    w2p = jnp.zeros((k, cout_p, cout_p), jnp.float32)
    w2p = w2p.at[:, :cout, :cout].set(w2.astype(jnp.float32))
    b2p = jnp.zeros((1, cout_p), jnp.float32).at[0, :cout].set(b2.astype(jnp.float32))

    params = dict(w1=w1p.astype(jnp.bfloat16), b1=b1p,
                  w2=w2p.astype(jnp.bfloat16), b2=b2p)
    meta = dict(k=int(k), cin=int(cin), cout=int(cout),
                cin_p=int(cin_p), cout_p=int(cout_p), has_down=bool(has_down))
    return params, meta


# ----------------------------------------------------------------------------
# Kernel: one grid step == one (batch, time-tile).  The whole block (2 dilated
# convs + downsample + residual + ReLUs) runs on a (tT + 2p)-row causal window.
# ----------------------------------------------------------------------------
def make_block_kernel(tT, dilation, k, cin_p, cout_p, has_down):
    p = dilation * (k - 1)  # causal left context per conv

    def kernel(x_ref, halo_ref, w1_ref, b1_ref, w2_ref, b2_ref, o_ref,
               xwin_ref, hbuf_ref):
        t = pl.program_id(1)

        # ---- assemble causal input window: [halo (2p rows) | tile (tT rows)]
        xwin_ref[0:2 * p, :] = halo_ref[...]
        xwin_ref[2 * p:2 * p + tT, :] = x_ref[...]

        # ---- conv1 (+ fused 1x1 downsample): k accumulating per-tap matmuls
        #      over tT + p rows (extra p rows recompute the hidden halo).
        acc1 = jnp.dot(xwin_ref[0:tT + p, :], w1_ref[0],
                       preferred_element_type=jnp.float32)
        for j in range(1, k):
            acc1 = acc1 + jnp.dot(
                xwin_ref[dilation * j:dilation * j + tT + p, :], w1_ref[j],
                preferred_element_type=jnp.float32)
        acc1 = acc1 + b1_ref[...]

        # chomp + ReLU.  Hidden rows before time 0 must be exactly zero (conv2
        # causally pads h with zeros, NOT conv1(zero-padded x)).
        h = jnp.maximum(acc1[:, 0:cout_p], 0.0)
        row = jax.lax.broadcasted_iota(jnp.int32, (tT + p, 1), 0)
        valid = (t * tT - p + row) >= 0
        hbuf_ref[...] = jnp.where(valid, h, 0.0).astype(jnp.bfloat16)
        # dropout1: identity (inference)

        if has_down:
            res = acc1[p:p + tT, cout_p:2 * cout_p]            # downsample(x), f32
        else:
            res = xwin_ref[2 * p:2 * p + tT, :].astype(jnp.float32)

        # ---- conv2: k accumulating per-tap matmuls over tT rows.
        acc2 = jnp.dot(hbuf_ref[0:tT, :], w2_ref[0],
                       preferred_element_type=jnp.float32)
        for j in range(1, k):
            acc2 = acc2 + jnp.dot(
                hbuf_ref[dilation * j:dilation * j + tT, :], w2_ref[j],
                preferred_element_type=jnp.float32)
        out2 = jnp.maximum(acc2 + b2_ref[...], 0.0)            # chomp + ReLU
        # dropout2: identity (inference)

        # ---- residual add + final ReLU, fused into the bf16 output store.
        o_ref[...] = jnp.maximum(out2 + res, 0.0).astype(o_ref.dtype)

    return kernel


# ----------------------------------------------------------------------------
# Tile-size heuristic: biggest time tile whose double-buffered working set fits
# a conservative VMEM budget (safe on v5e/v6e 128 MiB and v7x 64 MiB).
# ----------------------------------------------------------------------------
def _choose_time_tile(T, p, cin_p, cout_p, n1, batch, budget_bytes=8 << 20):
    per_row = (2 * cin_p * 2 + 2 * cout_p * 2      # double-buffered bf16 in/out
               + cin_p * 2 + cout_p * 2            # bf16 window / hidden scratch
               + n1 * 4 + 2 * cout_p * 4)          # f32 accumulators
    tT = max(8, (budget_bytes // per_row) // 8 * 8)
    tT = min(tT, _round_up(T, 8), 4096)
    # v7x has 2 TensorCores; make sure the parallel grid has >= 2 steps.
    if batch == 1 and tT >= T and T > 8:
        tT = _round_up(-(-T // 2), 8)
    return int(tT)


# ----------------------------------------------------------------------------
# Padded-layout entry point: (B, T, Cin_p) bf16 -> (B, T, Cout_p) bf16.
# Chain stacked blocks through this to avoid per-block transposes/padding.
# ----------------------------------------------------------------------------
def temporal_block_apply_padded(x_btc, params, *, dilation, meta, time_tile=None):
    B, T, cin_p = x_btc.shape
    k, cout_p, has_down = meta["k"], meta["cout_p"], meta["has_down"]
    assert cin_p == meta["cin_p"]
    p = dilation * (k - 1)
    assert p >= 1, "kernel_size must be >= 2 (chomp of 0 is degenerate)"
    n1 = 2 * cout_p if has_down else cout_p

    tT = time_tile or _choose_time_tile(T, p, cin_p, cout_p, n1, B)
    nT = -(-T // tT)
    T_pad = nT * tT

    x = x_btc.astype(jnp.bfloat16)
    if T_pad != T:
        x = jnp.pad(x, ((0, 0), (0, T_pad - T), (0, 0)))
    # Per-tile causal halo: the 2p rows preceding each tile (zeros before t=0).
    x_lp = jnp.pad(x, ((0, 0), (2 * p, 0), (0, 0)))
    halo = jnp.stack([x_lp[:, t * tT:t * tT + 2 * p, :] for t in range(nT)],
                     axis=1)                                    # (B, nT, 2p, Cin_p)

    kernel = make_block_kernel(tT, dilation, k, cin_p, cout_p, has_down)
    out = pl.pallas_call(
        kernel,
        out_shape=jax.ShapeDtypeStruct((B, T_pad, cout_p), jnp.bfloat16),
        grid=(B, nT),
        in_specs=[
            pl.BlockSpec((None, tT, cin_p), lambda b, t: (b, t, 0)),
            pl.BlockSpec((None, None, 2 * p, cin_p), lambda b, t: (b, t, 0, 0)),
            pl.BlockSpec((k, cin_p, n1), lambda b, t: (0, 0, 0)),
            pl.BlockSpec((1, n1), lambda b, t: (0, 0)),
            pl.BlockSpec((k, cout_p, cout_p), lambda b, t: (0, 0, 0)),
            pl.BlockSpec((1, cout_p), lambda b, t: (0, 0)),
        ],
        out_specs=pl.BlockSpec((None, tT, cout_p), lambda b, t: (b, t, 0)),
        scratch_shapes=[
            pltpu.VMEM((tT + 2 * p, cin_p), jnp.bfloat16),   # causal input window
            pltpu.VMEM((tT + p, cout_p), jnp.bfloat16),      # hidden (with halo)
        ],
        compiler_params=pltpu.CompilerParams(
            dimension_semantics=("parallel", "parallel"),
            vmem_limit_bytes=32 * 1024 * 1024),
    )(x, halo, params["w1"], params["b1"], params["w2"], params["b2"])

    return out[:, :T, :]


# ----------------------------------------------------------------------------
# NCL in / NCL out wrapper (layout conversion done once per network ideally).
# ----------------------------------------------------------------------------
def temporal_block_forward(x_ncl, params, *, dilation, meta, time_tile=None):
    B, cin, T = x_ncl.shape
    cin_p, cout = meta["cin_p"], meta["cout"]
    x = jnp.transpose(x_ncl, (0, 2, 1)).astype(jnp.bfloat16)   # NCL -> NTC, bf16
    x = jnp.pad(x, ((0, 0), (0, 0), (0, cin_p - cin)))         # lane-pad channels
    out_p = temporal_block_apply_padded(x, params, dilation=dilation, meta=meta,
                                        time_tile=time_tile)
    return jnp.transpose(out_p[:, :, :cout], (0, 2, 1)).astype(jnp.float32)


# ----------------------------------------------------------------------------
# Pure-JAX f32 reference for correctness checking.
# ----------------------------------------------------------------------------
def ref_temporal_block(x_ncl, w1, b1, w2, b2, wd, bd, dilation):
    k = w1.shape[0]
    p = dilation * (k - 1)
    x = jnp.transpose(x_ncl, (0, 2, 1)).astype(jnp.float32)    # (B, T, Cin)
    B, T, _ = x.shape
    hi = jax.lax.Precision.HIGHEST

    def causal_conv(inp, w, b):
        xp = jnp.pad(inp, ((0, 0), (p, 0), (0, 0)))
        acc = jnp.zeros((B, T, w.shape[2]), jnp.float32) + b[None, None, :]
        for j in range(k):
            acc = acc + jnp.einsum("btc,co->bto",
                                   xp[:, dilation * j:dilation * j + T, :],
                                   w[j], precision=hi)
        return acc

    h = jnp.maximum(causal_conv(x, w1, b1), 0.0)
    out2 = jnp.maximum(causal_conv(h, w2, b2), 0.0)
    if wd is None:
        res = x
    else:
        res = jnp.einsum("btc,co->bto", x, wd, precision=hi) + bd[None, None, :]
    return jnp.transpose(jnp.maximum(out2 + res, 0.0), (0, 2, 1))


if __name__ == "__main__":
    # Small shapes consistent with the module (Conv1d NCL layout).
    B, n_inputs, n_outputs, T = 2, 4, 8, 16
    kernel_size = 2

    key = jax.random.PRNGKey(0)
    ks = jax.random.split(key, 8)
    x = jax.random.normal(ks[0], (B, n_inputs, T), dtype=jnp.float32)

    def rnd(k_, shape):
        return 0.1 * jax.random.normal(k_, shape, dtype=jnp.float32)

    w1 = rnd(ks[1], (kernel_size, n_inputs, n_outputs))   # (k, Cin, Cout)
    b1 = rnd(ks[2], (n_outputs,))
    w2 = rnd(ks[3], (kernel_size, n_outputs, n_outputs))
    b2 = rnd(ks[4], (n_outputs,))
    wd = rnd(ks[5], (n_inputs, n_outputs))                 # 1x1 downsample
    bd = rnd(ks[6], (n_outputs,))

    # --- Block with downsample (n_inputs != n_outputs), dilation=1, 2 time tiles.
    params, meta = pack_temporal_block_params(w1, b1, w2, b2, wd, bd)
    fwd = jax.jit(functools.partial(temporal_block_forward,
                                    dilation=1, meta=meta, time_tile=8))
    out = fwd(x, params)
    jax.block_until_ready(out)
    assert out.shape == (B, n_outputs, T)
    ref = ref_temporal_block(x, w1, b1, w2, b2, wd, bd, 1)
    assert jnp.allclose(out, ref, atol=3e-2, rtol=3e-2), \
        float(jnp.max(jnp.abs(out - ref)))

    # --- Block with identity residual (n_inputs == n_outputs), dilation=2.
    w1b = rnd(ks[7], (kernel_size, n_outputs, n_outputs))
    params_b, meta_b = pack_temporal_block_params(w1b, b1, w2, b2, None, None)
    fwd_b = jax.jit(functools.partial(temporal_block_forward,
                                      dilation=2, meta=meta_b, time_tile=8))
    out_b = fwd_b(ref, params_b)
    jax.block_until_ready(out_b)
    assert out_b.shape == (B, n_outputs, T)
    ref_b = ref_temporal_block(ref, w1b, b1, w2, b2, None, None, 2)
    assert jnp.allclose(out_b, ref_b, atol=3e-2, rtol=3e-2), \
        float(jnp.max(jnp.abs(out_b - ref_b)))

    print("KERNEL_OK")
</pallas_src>

<mosaic_0001>
module attributes {stable_mosaic.version = 11 : i64} {
  func.func @kernel(%arg0: i32, %arg1: i32, %arg2: memref<1x8x128xbf16, #tpu.memory_space<vmem>>, %arg3: memref<1x1x2x128xbf16, #tpu.memory_space<vmem>>, %arg4: memref<2x128x256xbf16, #tpu.memory_space<vmem>>, %arg5: memref<1x256xf32, #tpu.memory_space<vmem>>, %arg6: memref<2x128x128xbf16, #tpu.memory_space<vmem>>, %arg7: memref<1x128xf32, #tpu.memory_space<vmem>>, %arg8: memref<1x8x128xbf16, #tpu.memory_space<vmem>>, %arg9: memref<10x128xbf16, #tpu.memory_space<vmem>>, %arg10: memref<9x128xbf16, #tpu.memory_space<vmem>>) attributes {dimension_semantics = [#tpu.dimension_semantics<parallel>, #tpu.dimension_semantics<parallel>], iteration_bounds = array<i64: 2, 2>, scalar_prefetch = 0 : i64, scratch_operands = 2 : i64, tpu.core_type = #tpu.core_type<tc>, window_params = [{transform_indices = @transform_0, window_bounds = array<i64: 1, 8, 128>}, {transform_indices = @transform_1, window_bounds = array<i64: 1, 1, 2, 128>}, {pipeline_mode = #tpu.pipeline_mode<synchronous>, transform_indices = @transform_2, window_bounds = array<i64: 2, 128, 256>}, {pipeline_mode = #tpu.pipeline_mode<synchronous>, transform_indices = @transform_3, window_bounds = array<i64: 1, 256>}, {pipeline_mode = #tpu.pipeline_mode<synchronous>, transform_indices = @transform_4, window_bounds = array<i64: 2, 128, 128>}, {pipeline_mode = #tpu.pipeline_mode<synchronous>, transform_indices = @transform_5, window_bounds = array<i64: 1, 128>}, {transform_indices = @transform_6, window_bounds = array<i64: 1, 8, 128>}]} {
    %c0 = arith.constant 0 : index
    %c0_0 = arith.constant 0 : index
    %c0_1 = arith.constant 0 : index
    %c0_2 = arith.constant 0 : index
    %0 = vector.load %arg3[%c0, %c0_0, %c0_1, %c0_2] : memref<1x1x2x128xbf16, #tpu.memory_space<vmem>>, vector<1x1x2x128xbf16>
    %1 = vector.shape_cast %0 : vector<1x1x2x128xbf16> to vector<2x128xbf16>
    %c0_3 = arith.constant 0 : index
    %c0_4 = arith.constant 0 : index
    %2 = vector.load %arg9[%c0_3, %c0_4] : memref<10x128xbf16, #tpu.memory_space<vmem>>, vector<2x128xbf16>
    tpu.vector_store %arg9[%c0_3, %c0_4], %1 {strides = array<i32>} : memref<10x128xbf16, #tpu.memory_space<vmem>>, vector<2x128xbf16>,
    %c0_5 = arith.constant 0 : index
    %c0_6 = arith.constant 0 : index
    %c0_7 = arith.constant 0 : index
    %3 = vector.load %arg2[%c0_5, %c0_6, %c0_7] : memref<1x8x128xbf16, #tpu.memory_space<vmem>>, vector<1x8x128xbf16>
    %4 = vector.shape_cast %3 : vector<1x8x128xbf16> to vector<8x128xbf16>
    %c2 = arith.constant 2 : index
    %c0_8 = arith.constant 0 : index
    %5 = vector.load %arg9[%c2, %c0_8] : memref<10x128xbf16, #tpu.memory_space<vmem>>, vector<8x128xbf16>
    tpu.vector_store %arg9[%c2, %c0_8], %4 {strides = array<i32>} : memref<10x128xbf16, #tpu.memory_space<vmem>>, vector<8x128xbf16>,
    %c0_9 = arith.constant 0 : index
    %c0_10 = arith.constant 0 : index
    %6 = vector.load %arg9[%c0_9, %c0_10] : memref<10x128xbf16, #tpu.memory_space<vmem>>, vector<9x128xbf16>
    %c0_11 = arith.constant 0 : index
    %c0_12 = arith.constant 0 : index
    %c0_13 = arith.constant 0 : index
    %7 = vector.load %arg4[%c0_11, %c0_12, %c0_13] : memref<2x128x256xbf16, #tpu.memory_space<vmem>>, vector<1x128x256xbf16>
    %8 = vector.shape_cast %7 : vector<1x128x256xbf16> to vector<128x256xbf16>
    %cst = arith.constant dense<0.000000e+00> : vector<9x256xf32>
    %9 = tpu.matmul %6, %8, %cst {dimension_numbers = #tpu.dot_dimension_numbers<[1], [0], [0], [1], [0, 0, 1, 1], [], []>} : vector<9x128xbf16>, vector<128x256xbf16>, vector<9x256xf32> -> vector<9x256xf32>
    %c1 = arith.constant 1 : index
    %c0_14 = arith.constant 0 : index
    %10 = vector.load %arg9[%c1, %c0_14] : memref<10x128xbf16, #tpu.memory_space<vmem>>, vector<9x128xbf16>
    %c1_15 = arith.constant 1 : index
    %c0_16 = arith.constant 0 : index
    %c0_17 = arith.constant 0 : index
    %11 = vector.load %arg4[%c1_15, %c0_16, %c0_17] : memref<2x128x256xbf16, #tpu.memory_space<vmem>>, vector<1x128x256xbf16>
    %12 = vector.shape_cast %11 : vector<1x128x256xbf16> to vector<128x256xbf16>
    %cst_18 = arith.constant dense<0.000000e+00> : vector<9x256xf32>
    %13 = tpu.matmul %10, %12, %cst_18 {dimension_numbers = #tpu.dot_dimension_numbers<[1], [0], [0], [1], [0, 0, 1, 1], [], []>} : vector<9x128xbf16>, vector<128x256xbf16>, vector<9x256xf32> -> vector<9x256xf32>
    %14 = arith.addf %9, %13 : vector<9x256xf32>
    %c0_19 = arith.constant 0 : index
    %c0_20 = arith.constant 0 : index
    %15 = vector.load %arg5[%c0_19, %c0_20] : memref<1x256xf32, #tpu.memory_space<vmem>>, vector<1x256xf32>
    %16 = vector.broadcast %15 : vector<1x256xf32> to vector<9x256xf32>
    %17 = arith.addf %14, %16 : vector<9x256xf32>
    %18 = vector.extract_strided_slice %17 {offsets = [0, 0], sizes = [9, 128], strides = [1, 1]} : vector<9x256xf32> to vector<9x128xf32>
    %cst_21 = arith.constant 0.000000e+00 : f32
    %19 = vector.broadcast %cst_21 : f32 to vector<9x128xf32>
    %20 = arith.maximumf %18, %19 : vector<9x128xf32>
    %21 = tpu.iota {dimensions = array<i32: 0>} : vector<9x1xi32>
    %c8_i32 = arith.constant 8 : i32
    %22 = arith.muli %arg1, %c8_i32 : i32
    %c1_i32 = arith.constant 1 : i32
    %23 = arith.subi %22, %c1_i32 : i32
    %24 = vector.broadcast %23 : i32 to vector<9x1xi32>
    %25 = arith.addi %24, %21 : vector<9x1xi32>
    %c0_i32 = arith.constant 0 : i32
    %26 = vector.broadcast %c0_i32 : i32 to vector<9x1xi32>
    %27 = arith.cmpi sge, %25, %26 : vector<9x1xi32>
    %cst_22 = arith.constant 0.000000e+00 : f32
    %28 = vector.shape_cast %27 : vector<9x1xi1> to vector<9x1xi1>
    %29 = vector.broadcast %28 : vector<9x1xi1> to vector<9x128xi1>
    %30 = vector.broadcast %cst_22 : f32 to vector<9x128xf32>
    %31 = arith.select %29, %20, %30 : vector<9x128xi1>, vector<9x128xf32>
    %32 = arith.truncf %31 : vector<9x128xf32> to vector<9x128xbf16>
    %c0_23 = arith.constant 0 : index
    %c0_24 = arith.constant 0 : index
    %33 = vector.load %arg10[%c0_23, %c0_24] : memref<9x128xbf16, #tpu.memory_space<vmem>>, vector<9x128xbf16>
    tpu.vector_store %arg10[%c0_23, %c0_24], %32 {strides = array<i32>} : memref<9x128xbf16, #tpu.memory_space<vmem>>, vector<9x128xbf16>,
    %34 = vector.extract_strided_slice %17 {offsets = [1, 128], sizes = [8, 128], strides = [1, 1]} : vector<9x256xf32> to vector<8x128xf32>
    %c0_25 = arith.constant 0 : index
    %c0_26 = arith.constant 0 : index
    %35 = vector.load %arg10[%c0_25, %c0_26] : memref<9x128xbf16, #tpu.memory_space<vmem>>, vector<8x128xbf16>
    %c0_27 = arith.constant 0 : index
    %c0_28 = arith.constant 0 : index
    %c0_29 = arith.constant 0 : index
    %36 = vector.load %arg6[%c0_27, %c0_28, %c0_29] : memref<2x128x128xbf16, #tpu.memory_space<vmem>>, vector<1x128x128xbf16>
    %37 = vector.shape_cast %36 : vector<1x128x128xbf16> to vector<128x128xbf16>
    %cst_30 = arith.constant dense<0.000000e+00> : vector<8x128xf32>
    %38 = tpu.matmul %35, %37, %cst_30 {dimension_numbers = #tpu.dot_dimension_numbers<[1], [0], [0], [1], [0, 0, 1, 1], [], []>} : vector<8x128xbf16>, vector<128x128xbf16>, vector<8x128xf32> -> vector<8x128xf32>
    %c1_31 = arith.constant 1 : index
    %c0_32 = arith.constant 0 : index
    %39 = vector.load %arg10[%c1_31, %c0_32] : memref<9x128xbf16, #tpu.memory_space<vmem>>, vector<8x128xbf16>
    %c1_33 = arith.constant 1 : index
    %c0_34 = arith.constant 0 : index
    %c0_35 = arith.constant 0 : index
    %40 = vector.load %arg6[%c1_33, %c0_34, %c0_35] : memref<2x128x128xbf16, #tpu.memory_space<vmem>>, vector<1x128x128xbf16>
    %41 = vector.shape_cast %40 : vector<1x128x128xbf16> to vector<128x128xbf16>
    %cst_36 = arith.constant dense<0.000000e+00> : vector<8x128xf32>
    %42 = tpu.matmul %39, %41, %cst_36 {dimension_numbers = #tpu.dot_dimension_numbers<[1], [0], [0], [1], [0, 0, 1, 1], [], []>} : vector<8x128xbf16>, vector<128x128xbf16>, vector<8x128xf32> -> vector<8x128xf32>
    %43 = arith.addf %38, %42 : vector<8x128xf32>
    %c0_37 = arith.constant 0 : index
    %c0_38 = arith.constant 0 : index
    %44 = vector.load %arg7[%c0_37, %c0_38] : memref<1x128xf32, #tpu.memory_space<vmem>>, vector<1x128xf32>
    %45 = vector.broadcast %44 : vector<1x128xf32> to vector<8x128xf32>
    %46 = arith.addf %43, %45 : vector<8x128xf32>
    %cst_39 = arith.constant 0.000000e+00 : f32
    %47 = vector.broadcast %cst_39 : f32 to vector<8x128xf32>
    %48 = arith.maximumf %46, %47 : vector<8x128xf32>
    %49 = arith.addf %48, %34 : vector<8x128xf32>
    %cst_40 = arith.constant 0.000000e+00 : f32
    %50 = vector.broadcast %cst_40 : f32 to vector<8x128xf32>
    %51 = arith.maximumf %49, %50 : vector<8x128xf32>
    %52 = arith.truncf %51 : vector<8x128xf32> to vector<8x128xbf16>
    %c0_41 = arith.constant 0 : index
    %c0_42 = arith.constant 0 : index
    %c0_43 = arith.constant 0 : index
    %53 = vector.load %arg8[%c0_41, %c0_42, %c0_43] : memref<1x8x128xbf16, #tpu.memory_space<vmem>>, vector<1x8x128xbf16>
    %54 = vector.shape_cast %53 : vector<1x8x128xbf16> to vector<8x128xbf16>
    %55 = vector.shape_cast %52 : vector<8x128xbf16> to vector<1x8x128xbf16>
    tpu.vector_store %arg8[%c0_41, %c0_42, %c0_43], %55 {strides = array<i32>} : memref<1x8x128xbf16, #tpu.memory_space<vmem>>, vector<1x8x128xbf16>,
    return
  }
  func.func @transform_0(%arg0: i32, %arg1: i32) -> (i32, i32, i32) {
    %c0_i32 = arith.constant 0 : i32
    %c0_i32_0 = arith.constant 0 : i32
    return %arg0, %arg1, %c0_i32 : i32, i32, i32
  }
  func.func @transform_1(%arg0: i32, %arg1: i32) -> (i32, i32, i32, i32) {
    %c0_i32 = arith.constant 0 : i32
    %c0_i32_0 = arith.constant 0 : i32
    %c0_i32_1 = arith.constant 0 : i32
    return %arg0, %arg1, %c0_i32, %c0_i32_0 : i32, i32, i32, i32
  }
  func.func @transform_2(%arg0: i32, %arg1: i32) -> (i32, i32, i32) {
    %c0_i32 = arith.constant 0 : i32
    %c0_i32_0 = arith.constant 0 : i32
    %c0_i32_1 = arith.constant 0 : i32
    %c0_i32_2 = arith.constant 0 : i32
    return %c0_i32, %c0_i32_0, %c0_i32_1 : i32, i32, i32
  }
  func.func @transform_3(%arg0: i32, %arg1: i32) -> (i32, i32) {
    %c0_i32 = arith.constant 0 : i32
    %c0_i32_0 = arith.constant 0 : i32
    %c0_i32_1 = arith.constant 0 : i32
    return %c0_i32, %c0_i32_0 : i32, i32
  }
  func.func @transform_4(%arg0: i32, %arg1: i32) -> (i32, i32, i32) {
    %c0_i32 = arith.constant 0 : i32
    %c0_i32_0 = arith.constant 0 : i32
    %c0_i32_1 = arith.constant 0 : i32
    %c0_i32_2 = arith.constant 0 : i32
    return %c0_i32, %c0_i32_0, %c0_i32_1 : i32, i32, i32
  }
  func.func @transform_5(%arg0: i32, %arg1: i32) -> (i32, i32) {
    %c0_i32 = arith.constant 0 : i32
    %c0_i32_0 = arith.constant 0 : i32
    %c0_i32_1 = arith.constant 0 : i32
    return %c0_i32, %c0_i32_0 : i32, i32
  }
  func.func @transform_6(%arg0: i32, %arg1: i32) -> (i32, i32, i32) {
    %c0_i32 = arith.constant 0 : i32
    %c0_i32_0 = arith.constant 0 : i32
    return %arg0, %arg1, %c0_i32 : i32, i32, i32
  }
}

</mosaic_0001>

<bundles_post_ra>
// kernel: temporal_block_forward.1
= control target key start
LH: loop header
LB: loop body
LE: loop exit
PB: predicated region body
PF: predicated region fallthrough
CT: control target
= control target key end

     0   :  { %11 = vsyncpa [#allocation5], 0  ;;  %s1563_s0 = inlined_call_operand.vmem [shape: bf16[2,16,128], index: 0, kind: input, shape index: {}]   ;;  %s1564_s1 = inlined_call_operand.vmem [shape: bf16[2,2,2,128], index: 1, kind: input, shape index: {}]   ;;  %s1565_s2 = inlined_call_operand.hbm [shape: bf16[2,128,256], index: 2, kind: input, shape index: {}]   ;;  %s1566_s3 = inlined_call_operand.vmem [shape: f32[1,256], index: 3, kind: input, shape index: {}]   ;;  %s1567_s4 = inlined_call_operand.hbm [shape: bf16[2,128,128], index: 4, kind: input, shape index: {}]   ;;  %s1568_s5 = inlined_call_operand.vmem [shape: f32[1,128], index: 5, kind: input, shape index: {}]   ;;  %s1569_s6 = inlined_call_operand.vmem [shape: bf16[2,16,128], index: 6, kind: output, shape index: {}]  }
   0x1   :  { %12 = vsyncpa [#allocation7], 0  ;;  %s1451_s21 = smov 0   ;;  %s1453_s22 = smov 0  }
   0x2   :  { %s1455_s23 = smov 0   ;;  %s1457_s24 = smov 0  }
   0x3   :  { %s1459_s25 = smov 0  }
   0x4 LB: > { %s968_s26 = sadd.s32 4294967295, %s1408_s25   ;;  %s27_s27 = sadd.s32 1, %s1400_s23  ;;  %s1408_s25 = sphi %s1459_s25, %s18_s25   ;;  %s1404_s24 = sphi %s1457_s24, %s1575_s24   ;;  %s1400_s23 = sphi %s1455_s23, %s1574_s23   ;;  %s1396_s22 = sphi %s1453_s22, %s1573_s22   ;;  %s1392_s21 = sphi %s1451_s21, %s1572_s21  }
   0x5   : > { %p28_p0 = scmp.ge.s32.totalorder %s27_s27, 2  ;;  %s30_s28 = sadd.s32 1, %s1404_s24 }
   0x6   : > { %p970_p1 = scmp.ge.s32.totalorder %s1408_s25, 1  ;;  %p203_p2 = scmp.lt.s32.totalorder %s1408_s25, 5 }
   0x7   : > { %s1577_s27 = smov (%p28_p0, %s27_s27), 0  ;;  %s1579_s28 = smov (!%p28_p0, %s30_s28), %s1404_s24 }
   0x8   : > { %p1484_p3 = pnand %p970_p1, %p203_p2  ;;  %p32_p4 = scmp.ge.s32.totalorder %s1579_s28, 2 }
   0x9   : > { %p1488_p5 = scmp.eq.s32.totalorder %s968_s26, 0  ;;  %s214_s9 = sshll.u32 %s1565_s2, 4  ;;  %s215_s9 = int_to_ptr.hbm [resolvable:$true] %s214_s9 }
   0xa   : > { %p1244_p6 = pneg %p1484_p3  ;;  %s1581_s28 = smov (%p32_p4, %s1579_s28), 0 }
   0xb   : > { %s1410_s10 = smov [#allocation4]   ;;  %s1411_s12 = smov 128  }
   0xc   : > { %s216_s11 = sshll.u32 %s1410_s10, 4  ;;  %p1245_p7 = pnand %p1488_p5, %p1244_p6  ;;  %s217_s11 = int_to_ptr.vmem [resolvable:$true] %s216_s11 }
   0xd   : > { %s1412_s13 = smov 8   ;;  %s231_s16 = sshll.u32 %s1567_s4, 4  ;;  %s232_s16 = int_to_ptr.hbm [resolvable:$true] %s231_s16 }
   0xe   : > { %1247 = dma.hbm_to_vmem [thread:$0]  (!%p1245_p7), %s215_s9, 4096, %s217_s11, [#allocation5], %s1411_s12, %s1411_s12, %s1412_s13  }
   0xf   : > { %s1413_s17 = smov [#allocation6]   ;;  %s1414_s19 = smov 64  }
  0x10   : > { %s233_s18 = sshll.u32 %s1413_s17, 4  ;;  %s1415_s20 = smov 4   ;;  %s234_s18 = int_to_ptr.vmem [resolvable:$true] %s233_s18 }
  0x11   : > { %1250 = dma.hbm_to_vmem [thread:$0]  (!%p1245_p7), %s232_s16, 2048, %s234_s18, [#allocation7], %s1414_s19, %s1414_s19, %s1415_s20  }
  0x12   : > { %273 = sbr.rel (%p1484_p3) target bundleno = 367 (0x16f), region = 44 }
  0x17   : > { %1383 = dma.done.wait (%p1488_p5), [#allocation5], 4096  }
  0x18   : > { %1385 = vsyncadd (%p1488_p5), [#allocation5], 4294963200 }
  0x19   : > { %1387 = dma.done.wait (%p1488_p5), [#allocation7], 2048  }
  0x1a   : > { %1389 = vsyncadd (%p1488_p5), [#allocation7], 4294965248  ;;  %p322_p8 = scmp.lt.s32.totalorder %s1396_s22, 1  ;;  %p324_p9 = scmp.lt.s32.totalorder %s1392_s21, 1  ;;  %v1044_v0 = vld [vmem:[#allocation4 + $0xf0] sm:$0xf] }
  0x1b   : > { %v1218_v1 = vld [vmem:[#allocation4 + $0xf4] sm:$0xf0]  ;;  %v1108_v2 = vld [vmem:[#allocation4 + $0x70] sm:$0xf]  ;;  %v1036_v5 = vld [vmem:[#allocation4 + $0xe0] sm:$0xf] }
  0x1c   : > { %s1583_s22 = smov (!%p322_p8, %s1396_s22), 1  ;;  %v1045_v3 = vor.u32 %v1218_v1, %v1044_v0  ;;  %v1202_v4 = vld [vmem:[#allocation4 + $0x74] sm:$0xf0]  ;;  %v1216_v6 = vld [vmem:[#allocation4 + $0xe4] sm:$0xf0]  ;;  %s1114_s13 = sshll.u32 %s1392_s21, 3 }
  0x1d   : > { %s325_s26 = scalar_select %p324_p9, %s1392_s21, 1  ;;  %v1109_v7 = vor.u32 %v1202_v4, %v1108_v2  ;;  %v1100_v8 = vld [vmem:[#allocation4 + $0x60] sm:$0xf]  ;;  %v1200_v9 = vld [vmem:[#allocation4 + $0x64] sm:$0xf0]  ;;  %v1037_v10 = vor.u32 %v1216_v6, %v1036_v5  ;;  %vm651_vm2 = vcmask 1040384  }
  0x1e   : > { %s977_s29 = sshll.u32 %s1583_s22, 1  ;;  %483 = vmatpush.bf16.msra.mxu0 %v1045_v3  ;;  %v1101_v11 = vor.u32 %v1200_v9, %v1100_v8  ;;  %v1028_v12 = vld [vmem:[#allocation4 + $0xd0] sm:$0xf]  ;;  %v1214_v13 = vld [vmem:[#allocation4 + $0xd4] sm:$0xf0]  ;;  %s1115_s14 = sadd.s32 4294967295, %s1114_s13 }
  0x1f   : > { %s1518_s30 = sadd.s32 %s977_s29, %s325_s26  ;;  %592 = vmatpush.bf16.msra.mxu2 %v1109_v7  ;;  %v1092_v14 = vld [vmem:[#allocation4 + $0x50] sm:$0xf]  ;;  %v1198_v15 = vld [vmem:[#allocation4 + $0x54] sm:$0xf0]  ;;  %v1029_v16 = vor.u32 %v1214_v13, %v1028_v12  ;;  %v1020_v18 = vld [vmem:[#allocation4 + $0xc0] sm:$0xf] }
  0x20   : > { %s978_s22 = sshll.u32 %s1518_s30, 2  ;;  %s336_s9 = scalar_lea.vmem %s1564_s1, %s1518_s30  ;;  %v1093_v17 = vor.u32 %v1198_v15, %v1092_v14  ;;  %v1212_v19 = vld [vmem:[#allocation4 + $0xc4] sm:$0xf0]  ;;  %v1084_v20 = vld [vmem:[#allocation4 + $0x40] sm:$0xf]  ;;  %vm835_vm5 = vcmask 1046528  }
  0x21   : > { %s329_s12 = scalar_lea.vmem %s1563_s0, %s978_s22  ;;  %v1196_v21 = vld [vmem:[#allocation4 + $0x44] sm:$0xf0]  ;;  %v1012_v22 = vld [vmem:[#allocation4 + $0xb0] sm:$0xf]  ;;  %v1210_v23 = vld [vmem:[#allocation4 + $0xb4] sm:$0xf0]  ;;  %v1021_v25 = vor.u32 %v1212_v19, %v1020_v18  ;;  %s344_s20 = scalar_lea.vmem %s1569_s6, %s978_s22 }
  0x22   : > { %484 = vmatpush.bf16.msra.mxu0 %v1037_v10  ;;  %v345_v24 = vld [vmem:[%s336_s9] sm:$0x1]  ;;  %v1217_v27 = vld [vmem:[#allocation4 + $0xf4] sm:$0xf]  ;;  %v1085_v28 = vor.u32 %v1196_v21, %v1084_v20  ;;  %v1046_v30 = vld [vmem:[#allocation4 + $0xf8] sm:$0xf0]  ;;  %v1013_v38 = vor.u32 %v1210_v23, %v1012_v22 }
  0x23   : > { %593 = vmatpush.bf16.msra.mxu2 %v1101_v11  ;;  %346 = vst [vmem:[#allocation2] sm:$0x1] %v345_v24  ;;  %v347_v26 = vld [vmem:[%s329_s12] sm:$0xf]  ;;  %v1215_v31 = vld [vmem:[#allocation4 + $0xe4] sm:$0xf]  ;;  %v1049_v34 = vor.u32 %v1217_v27, %v1046_v30 }
  0x24   : > { %v349_v29 = vrot.slane %v347_v26, 7  ;;  %v1076_v32 = vld [vmem:[#allocation4 + $0x30] sm:$0xf]  ;;  %v1194_v33 = vld [vmem:[#allocation4 + $0x34] sm:$0xf0] }
  0x25   : > { %v1038_v35 = vld [vmem:[#allocation4 + $0xe8] sm:$0xf0]  ;;  %v1004_v36 = vld [vmem:[#allocation4 + $0xa0] sm:$0xf]  ;;  %v1208_v39 = vld [vmem:[#allocation4 + $0xa4] sm:$0xf0]  ;;  %497 = vmatpush.bf16.msra.mxu1 %v1049_v34  ;;  %v1077_v43 = vor.u32 %v1194_v33, %v1076_v32 }
  0x26   : > { %485 = vmatpush.bf16.msra.mxu0 %v1029_v16  ;;  %v350_v37 = vrot.slane %v349_v29, 4  ;;  %353 = vst [vmem:[#allocation2] sm:$0xe] %v349_v29  ;;  %v1041_v40 = vor.u32 %v1215_v31, %v1038_v35  ;;  %v1213_v41 = vld [vmem:[#allocation4 + $0xd4] sm:$0xf]  ;;  %v1005_v51 = vor.u32 %v1208_v39, %v1004_v36  ;;  %v1226_v34 = vld [vmem:[#allocation6 + $0x38] sm:$0xff] }
  0x27   : > { %594 = vmatpush.bf16.msra.mxu2 %v1093_v17  ;;  %v1030_v42 = vld [vmem:[#allocation4 + $0xd8] sm:$0xf0]  ;;  %v1201_v44 = vld [vmem:[#allocation4 + $0x74] sm:$0xf]  ;;  %v1068_v46 = vld [vmem:[#allocation4 + $0x20] sm:$0xf] }
  0x28   : > { %354 = vst [vmem:[#allocation2 + $0x4] sm:$0x1] %v350_v37  ;;  %v1110_v45 = vld [vmem:[#allocation4 + $0x78] sm:$0xf0]  ;;  %v1192_v47 = vld [vmem:[#allocation4 + $0x24] sm:$0xf0]  ;;  %v1033_v55 = vor.u32 %v1213_v41, %v1030_v42 }
  0x29   : > { %v1113_v48 = vor.u32 %v1201_v44, %v1110_v45  ;;  %v1199_v49 = vld [vmem:[#allocation4 + $0x64] sm:$0xf]  ;;  %v1102_v50 = vld [vmem:[#allocation4 + $0x68] sm:$0xf0]  ;;  %v996_v52 = vld [vmem:[#allocation4 + $0x90] sm:$0xf]  ;;  %498 = vmatpush.bf16.msra.mxu1 %v1041_v40  ;;  %v1069_v56 = vor.u32 %v1192_v47, %v1068_v46 }
  0x2a   : > { %486 = vmatpush.bf16.msra.mxu0 %v1021_v25  ;;  %v1206_v53 = vld [vmem:[#allocation4 + $0x94] sm:$0xf0]  ;;  %v1060_v54 = vld [vmem:[#allocation4 + $0x10] sm:$0xf]  ;;  %v1211_v58 = vld [vmem:[#allocation4 + $0xc4] sm:$0xf]  ;;  %v1105_v60 = vor.u32 %v1199_v49, %v1102_v50 }
  0x2b   : > { %595 = vmatpush.bf16.msra.mxu2 %v1085_v28  ;;  %v1190_v57 = vld [vmem:[#allocation4 + $0x14] sm:$0xf0]  ;;  %v1022_v59 = vld [vmem:[#allocation4 + $0xc8] sm:$0xf0]  ;;  %606 = vmatpush.bf16.msra.mxu3 %v1113_v48  ;;  %v1197_v62 = vld [vmem:[#allocation4 + $0x54] sm:$0xf]  ;;  %v997_v0 = vor.u32 %v1206_v53, %v996_v52 }
  0x2c   : > { %v1094_v63 = vld [vmem:[#allocation4 + $0x58] sm:$0xf0]  ;;  %v988_v1 = vld [vmem:[#allocation4 + $0x80] sm:$0xf]  ;;  %v1204_v2 = vld [vmem:[#allocation4 + $0x84] sm:$0xf0]  ;;  %v1025_v4 = vor.u32 %v1211_v58, %v1022_v59  ;;  %v1061_v5 = vor.u32 %v1190_v57, %v1060_v54  ;;  %v632_v57 = vlaneseq }
  0x2d   : > { %v984_v61 = vld [vmem:[#allocation2] sm:$0xf]  ;;  %499 = vmatpush.bf16.msra.mxu1 %v1033_v55  ;;  %v1052_v6 = vld [vmem:[#allocation4] sm:$0xf]  ;;  %v1209_v8 = vld [vmem:[#allocation4 + $0xb4] sm:$0xf]  ;;  %v1097_v10 = vor.u32 %v1197_v62, %v1094_v63  ;;  %v989_v16 = vor.u32 %v1204_v2, %v988_v1  ;;  %v637_v62 = vstv %s1115_s14 }
  0x2e   : > { %487 = vmatpush.bf16.msra.mxu0 %v1013_v38  ;;  %v1014_v9 = vld [vmem:[#allocation4 + $0xb8] sm:$0xf0]  ;;  %v1188_v11 = vld [vmem:[#allocation4 + $0x4] sm:$0xf0]  ;;  %v1195_v12 = vld [vmem:[#allocation4 + $0x44] sm:$0xf] }
  0x2f   : > { %596 = vmatpush.bf16.msra.mxu2 %v1077_v43  ;;  %v1186_v3 = vld [vmem:[#allocation2] sm:$0x10]  ;;  %607 = vmatpush.bf16.msra.mxu3 %v1105_v60  ;;  %v1086_v13 = vld [vmem:[#allocation4 + $0x48] sm:$0xf0]  ;;  %v1017_v17 = vor.u32 %v1209_v8, %v1014_v9  ;;  %v1053_v18 = vor.u32 %v1188_v11, %v1052_v6  ;;  %v1207_v20 = vld [vmem:[#allocation4 + $0xa4] sm:$0xf] }
  0x30   : > { %v1530_v7 = vor.u32 %v1186_v3, %v984_v61  ;;  %v1006_v21 = vld [vmem:[#allocation4 + $0xa8] sm:$0xf0]  ;;  %v1089_v22 = vor.u32 %v1195_v12, %v1086_v13  ;;  %v1193_v23 = vld [vmem:[#allocation4 + $0x34] sm:$0xf]  ;;  %v1078_v24 = vld [vmem:[#allocation4 + $0x38] sm:$0xf0] }
  0x31   : > { %500 = vmatpush.bf16.msra.mxu1 %v1025_v4  ;;  %v1009_v26 = vor.u32 %v1207_v20, %v1006_v21  ;;  %v1205_v27 = vld [vmem:[#allocation4 + $0x94] sm:$0xf]  ;;  %v998_v28 = vld [vmem:[#allocation4 + $0x98] sm:$0xf0]  ;;  %v1081_v29 = vor.u32 %v1193_v23, %v1078_v24  ;;  %v1203_v31 = vld [vmem:[#allocation4 + $0x84] sm:$0xf] }
  0x32   : > { %488 = vmatpush.bf16.msra.mxu0 %v1005_v51  ;;  %v396_v14 = vshrl.u32 %v1530_v7, 16  ;;  %v398_v15 = vshll.u32 %v1530_v7, 16  ;;  %v1001_v30 = vor.u32 %v1205_v27, %v998_v28  ;;  %v990_v32 = vld [vmem:[#allocation4 + $0x88] sm:$0xf0]  ;;  %v1225_v35 = vld [vmem:[#allocation6 + $0x30] sm:$0xff]  ;;  %v1223_v43 = vld [vmem:[#allocation6 + $0x20] sm:$0xff] }
  0x33   : > { %597 = vmatpush.bf16.msra.mxu2 %v1069_v56  ;;  %608 = vmatpush.bf16.msra.mxu3 %v1097_v10  ;;  %v993_v33 = vor.u32 %v1203_v31, %v990_v32  ;;  %v1191_v36 = vld [vmem:[#allocation4 + $0x24] sm:$0xf]  ;;  %v1070_v37 = vld [vmem:[#allocation4 + $0x28] sm:$0xf0]  ;;  %v1189_v40 = vld [vmem:[#allocation4 + $0x14] sm:$0xf] }
  0x34   : > { %v400_v19 = vrot.slane %v398_v15, 1  ;;  %v1073_v38 = vor.u32 %v1191_v36, %v1070_v37  ;;  %v1224_v39 = vld [vmem:[#allocation6 + $0x28] sm:$0xff]  ;;  %v1062_v41 = vld [vmem:[#allocation4 + $0x18] sm:$0xf0]  ;;  %v1187_v44 = vld [vmem:[#allocation4 + $0x4] sm:$0xf] }
  0x35   : > { %501 = vmatpush.bf16.msra.mxu1 %v1017_v17  ;;  %v1065_v42 = vor.u32 %v1189_v40, %v1062_v41  ;;  %v1054_v45 = vld [vmem:[#allocation4 + $0x8] sm:$0xf0]  ;;  %v1222_v47 = vld [vmem:[#allocation6 + $0x18] sm:$0xff]  ;;  %v1221_v49 = vld [vmem:[#allocation6 + $0x10] sm:$0xff]  ;;  %v633_v60 = vshrl.u32 %v632_v57, 7 }
  0x36   : > { %489 = vmatpush.bf16.msra.mxu0 %v997_v0  ;;  %v401_v25 = vor.u32 %v400_v19, %v396_v14  ;;  %v1057_v46 = vor.u32 %v1187_v44, %v1054_v45  ;;  %v1235_v48 = vld [vmem:[#allocation6 + $0x78] sm:$0xff]  ;;  %v1234_v50 = vld [vmem:[#allocation6 + $0x70] sm:$0xff]  ;;  %v1220_v51 = vld [vmem:[#allocation6 + $0x8] sm:$0xff]  ;;  %vm652_vm3 = vsmask.f32 256 }
  0x37   : > { %598 = vmatpush.bf16.msra.mxu2 %v1061_v5  ;;  %609 = vmatpush.bf16.msra.mxu3 %v1089_v22  ;;  %v1233_v52 = vld [vmem:[#allocation6 + $0x68] sm:$0xff]  ;;  %v1219_v53 = vld [vmem:[#allocation6] sm:$0xff]  ;;  %v1231_v55 = vld [vmem:[#allocation6 + $0x58] sm:$0xff]  ;;  %v638_v2 = vadd.s32 %v637_v62, %v633_v60  ;;  %v634_v5 = vadd.s32 8, %v633_v60 }
  0x38   : > { %v1232_v54 = vld [vmem:[#allocation6 + $0x60] sm:$0xff]  ;;  %v1230_v56 = vld [vmem:[#allocation6 + $0x50] sm:$0xff]  ;;  %v1229_v58 = vld [vmem:[#allocation6 + $0x48] sm:$0xff] }
  0x39   : > { %502 = vmatpush.bf16.msra.mxu1 %v1009_v26  ;;  %v620_v59 = vld [vmem:[%s1566_s3] sm:$0x3]  ;;  %v1228_v61 = vld [vmem:[#allocation6 + $0x40] sm:$0xff]  ;;  %vm640_vm0 = vcmp.ge.s32.totalorder %v638_v2, 0  ;;  %v639_v11 = vadd.s32 %v637_v62, %v634_v5  ;;  %vm653_vm4 = vmand %vm651_vm2, %vm652_vm3 }
  0x3a   : > { %490 = vmatpush.bf16.msra.mxu0 %v989_v16  ;;  %v622_v0 = vperm.slane %v620_v59, 0  ;;  %v654_v16 = vld [vmem:[#allocation3 + $0x4] sm:$0x1] }
  0x3b   : > { %599 = vmatpush.bf16.msra.mxu2 %v1053_v18  ;;  %610 = vmatpush.bf16.msra.mxu3 %v1081_v29  ;;  %vm641_vm1 = vcmp.ge.s32.totalorder %v639_v11, 0 }
  0x3d   : > { %491 = vmatmul.bf16.vlgmr.msra.gmra.mxu0 %v401_v25  ;;  %503 = vmatpush.bf16.msra.mxu1 %v1001_v30 }
  0x3e   : > { %600 = vmatmul.bf16.vlgmr.msra.gmra.mxu2 %v1530_v7  ;;  %753 = vmatpush.bf16.msrb.mxu0 %v1235_v48 }
  0x3f   : > { %611 = vmatpush.bf16.msra.mxu3 %v1073_v38  ;;  %v1301_v38 = vld [vmem:[%s1568_s5] ss:$0 sm:$0xff] }
  0x41   : > { %504 = vmatpush.bf16.msra.mxu1 %v993_v33 }
  0x42   : > { %754 = vmatpush.bf16.msrb.mxu0 %v1234_v50 }
  0x43   : > { %612 = vmatpush.bf16.msra.mxu3 %v1065_v42 }
  0x44   : > { %505 = vmatmul.bf16.vlgmr.msra.gmra.mxu1 %v401_v25 }
  0x45   : > { %814 = vmatpush.bf16.msrb.mxu1 %v1226_v34  ;;  %v623_v34 = vperm.slane %v620_v59, 1 }
  0x46   : > { %755 = vmatpush.bf16.msrb.mxu0 %v1233_v52 }
  0x47   : > { %613 = vmatpush.bf16.msra.mxu3 %v1057_v46 }
  0x49   : > { %815 = vmatpush.bf16.msrb.mxu1 %v1225_v35 }
  0x4a   : > { %614 = vmatmul.bf16.vlgmr.msra.gmra.mxu3 %v1530_v7  ;;  %756 = vmatpush.bf16.msrb.mxu0 %v1232_v54 }
  0x4d   : > { %816 = vmatpush.bf16.msrb.mxu1 %v1224_v39 }
  0x4e   : > { %757 = vmatpush.bf16.msrb.mxu0 %v1231_v55 }
  0x51   : > { %817 = vmatpush.bf16.msrb.mxu1 %v1223_v43 }
  0x52   : > { %758 = vmatpush.bf16.msrb.mxu0 %v1230_v56 }
  0x55   : > { %818 = vmatpush.bf16.msrb.mxu1 %v1222_v47 }
  0x56   : > { %759 = vmatpush.bf16.msrb.mxu0 %v1229_v58 }
  0x59   : > { %819 = vmatpush.bf16.msrb.mxu1 %v1221_v49 }
  0x5a   : > { %760 = vmatpush.bf16.msrb.mxu0 %v1228_v61 }
  0x5d   : > { %820 = vmatpush.bf16.msrb.mxu1 %v1220_v51 }
  0x61   : > { %821 = vmatpush.bf16.msrb.mxu1 %v1219_v53 }
  0xba   : > { %v492_v63 = vpop.f32.mrf.mxu0 }
  0xc1   : > { %v601_v1 = vpop.f32.mrf.mxu2  ;;  %v506_v27 = vpop.f32.mrf.mxu1 }
  0xc2   : > { %v602_v3 = vadd.f32 %v601_v1, %v492_v63  ;;  %v494_v9 = vpop.f32.mrf.mxu0 }
  0xc4   : > { %v626_v4 = vadd.f32 %v622_v0, %v602_v3 }
  0xc6   : > { %v630_v6 = vmax.f32 %v626_v4, 0.0 }
  0xc8   : > { %v646_v7 = vsel %vm640_vm0, %v630_v6, 0.0 }
  0xc9   : > { %v648_v8 = vpack.c.bf16 %v646_v7, %v646_v7  ;;  %v603_v10 = vpop.f32.mrf.mxu2  ;;  %v508_v28 = vpop.f32.mrf.mxu1 }
  0xca   : > { %v604_v12 = vadd.f32 %v603_v10, %v494_v9 }
  0xcb   : > { %650 = vst [vmem:[#allocation3] sm:$0xf] %v648_v8 }
  0xcc   : > { %v628_v13 = vadd.f32 %v622_v0, %v604_v12 }
  0xcd   : > { %v615_v29 = vpop.f32.mrf.mxu3 }
  0xce   : > { %v631_v14 = vmax.f32 %v628_v13, 0.0  ;;  %v616_v33 = vadd.f32 %v615_v29, %v506_v27 }
  0xd0   : > { %v647_v15 = vsel %vm641_vm1, %v631_v14, 0.0  ;;  %v627_v36 = vadd.f32 %v623_v34, %v616_v33 }
  0xd1   : > { %v649_v17 = vpack.c.bf16 %v647_v15, %v647_v15 }
  0xd2   : > { %v657_v18 = vld [vmem:[#allocation3] sm:$0xf]  ;;  %v836_v41 = vrot.slane %v627_v36, 1 }
  0xd3   : > { %v655_v19 = vsel %vm653_vm4, %v649_v17, %v654_v16  ;;  %822 = vmatmul.bf16.vlgmr.msrb.gmra.mxu1 %v657_v18  ;;  %v1118_v20 = vld [vmem:[#allocation3] sm:$0xf] }
  0xd4   : > { %656 = vst [vmem:[#allocation3 + $0x4] sm:$0x1] %v655_v19 }
  0xd5   : > { %v617_v31 = vpop.f32.mrf.mxu3 }
  0xd6   : > { %v618_v35 = vadd.f32 %v617_v31, %v508_v28 }
  0xd8   : > { %v629_v37 = vadd.f32 %v623_v34, %v618_v35 }
  0xda   : > { %v837_v42 = vrot.slane %v629_v37, 1 }
  0xdb   : > { %v1227_v21 = vld [vmem:[#allocation3] sm:$0x10] }
  0xdc   : > { %v1119_v22 = vor.u32 %v1227_v21, %v1118_v20  ;;  %v838_v45 = vsel %vm835_vm5, %v836_v41, %v837_v42 }
  0xde   : > { %v700_v23 = vshll.u32 %v1119_v22, 16  ;;  %v698_v24 = vshrl.u32 %v1119_v22, 16 }
  0xe0   : > { %v702_v25 = vrot.slane %v700_v23, 1 }
  0xe2   : > { %v703_v26 = vor.u32 %v702_v25, %v698_v24 }
  0xe4   : > { %761 = vmatmul.bf16.vlgmr.msrb.gmra.mxu0 %v703_v26 }
 0x150   : > { %v823_v30 = vpop.f32.mrf.mxu1 }
 0x158   : > { %v825_v32 = vpop.f32.mrf.mxu1 }
 0x161   : > { %v762_v39 = vpop.f32.mrf.mxu0 }
 0x162   : > { %v824_v40 = vadd.f32 %v823_v30, %v762_v39 }
 0x164   : > { %v831_v43 = vadd.f32 %v1301_v38, %v824_v40 }
 0x166   : > { %v832_v44 = vmax.f32 %v831_v43, 0.0 }
 0x168   : > { %v840_v46 = vadd.f32 %v838_v45, %v832_v44 }
 0x169   : > { %v764_v47 = vpop.f32.mrf.mxu0 }
 0x16a   : > { %v841_v48 = vmax.f32 %v840_v46, 0.0 }
 0x16c   : > { %v842_v49 = vpack.c.bf16 %v841_v48, %v841_v48 }
 0x16e   : > { %843 = vst [vmem:[%s344_s20] sm:$0xf] %v842_v49 }
 0x16f PF: > { %s18_s25 = sadd.s32 1, %s1408_s25   ;;  %s1572_s21 = smov %s1400_s23 }
 0x170   : > { %p15_p10 = scmp.ge.s32.totalorder %s18_s25, 6   ;;  %s1573_s22 = smov %s1404_s24 }
 0x171   : > { %s1574_s23 = smov %s1577_s27  ;;  %s1575_s24 = smov %s1581_s28 }
 0x172   :  { %17 = sbr.rel (!%p15_p10) target bundleno = 4 (0x4), region = 88 }
 0x177   :  { %871 = vsyncpa [#allocation5], 1 }
 0x178   :  { %873 = vsyncpa [#allocation5 + $0x1], 1 }
 0x179   :  { %874 = vsyncpa [#allocation7], 1 }

</bundles_post_ra>
